<compile_context>
chip_gen: v7x
topology: tpu7x:2x2x1
jax: 0.10.0
libtpu: 0.0.40
codegen_flags: <defaults>
</compile_context>

<pallas_src>
import jax
import jax.numpy as jnp
from jax.experimental import pallas as pl
from jax.experimental.pallas import tpu as pltpu


def _elu_kernel(x_ref, o_ref):
    x = x_ref[...]
    xf = x.astype(jnp.float32)
    # Single select: half the VALU work of the mask-multiply formulation and
    # no 0*inf NaN hazard for large positive x.
    y = jnp.where(xf > 0, xf, 0.01 * xf * (jnp.exp(xf) - 1.0))
    o_ref[...] = y.astype(o_ref.dtype)


# Candidate lane widths (largest first) — all multiples of 128.
_LANE_WIDTHS = (4096, 2048, 1024, 512, 256, 128)
_TARGET_TILE_BYTES = 2 * 1024 * 1024  # ~2 MiB per block (in + out, x2 buffers = 8 MiB)


def elu_forward(x):
    """Apply the custom Elu forward elementwise via a Pallas TPU kernel."""
    orig_shape = x.shape
    dtype = x.dtype
    n = 1
    for d in orig_shape:
        n *= int(d)

    x_flat = x.reshape(-1)

    # Pick a wide, lane-dense last dimension. Prefer a factorization that
    # needs no padding (avoids two extra full-tensor HBM passes).
    lane_w = None
    for w in _LANE_WIDTHS:
        if n % w == 0:
            lane_w = w
            break

    if lane_w is not None:
        pad = 0
        x2d = x_flat.reshape(n // lane_w, lane_w)
    else:
        # Rare fallback: pad by < lane_w elements (tiny relative cost).
        lane_w = 1024
        padded = pl.cdiv(n, lane_w) * lane_w
        pad = padded - n
        x2d = jnp.pad(x_flat, (0, pad)).reshape(padded // lane_w, lane_w)

    rows = x2d.shape[0]
    row_bytes = lane_w * jnp.dtype(dtype).itemsize

    # ~2 MiB blocks, rows multiple of 8 (sublane constraint); if the whole
    # array is smaller than the target, take the full row extent.
    target_rows = max(8, _TARGET_TILE_BYTES // row_bytes)
    target_rows = (target_rows // 8) * 8
    if target_rows >= rows:
        block_rows = rows          # full extent on this axis -> always legal
    else:
        block_rows = target_rows   # multiple of 8; partial last block is masked

    grid = (pl.cdiv(rows, block_rows),)

    out2d = pl.pallas_call(
        _elu_kernel,
        out_shape=jax.ShapeDtypeStruct((rows, lane_w), dtype),
        grid_spec=pltpu.PrefetchScalarGridSpec(
            num_scalar_prefetch=0,
            grid=grid,
            in_specs=[pl.BlockSpec((block_rows, lane_w), lambda i: (i, 0))],
            out_specs=pl.BlockSpec((block_rows, lane_w), lambda i: (i, 0)),
        ),
        compiler_params=pltpu.CompilerParams(
            dimension_semantics=("parallel",),
        ),
    )(x2d)

    if pad:
        out = out2d.reshape(-1)[:n].reshape(orig_shape)
    else:
        out = out2d.reshape(orig_shape)
    return out


def elu_forward_ref(x):
    """Pure-JAX reference matching the PyTorch module's expression."""
    xf = x.astype(jnp.float32)
    pos = (xf > 0).astype(jnp.float32)
    neg = (xf <= 0).astype(jnp.float32)
    return (xf * (pos + 0.01 * (jnp.exp(xf) - 1.0) * neg)).astype(x.dtype)


if __name__ == "__main__":
    key = jax.random.PRNGKey(0)
    # NCHW-shaped example input (the module is shape-agnostic / elementwise).
    x = jax.random.normal(key, (2, 4, 16, 16), dtype=jnp.float32)

    out = elu_forward(x)
    out = jax.block_until_ready(out)

    ref = elu_forward_ref(x)
    assert out.shape == x.shape
    assert out.dtype == x.dtype
    assert jnp.allclose(out, ref, atol=1e-6, rtol=1e-6)

    print("KERNEL_OK")
</pallas_src>

<mosaic_0001>
module attributes {stable_mosaic.version = 11 : i64} {
  func.func @_elu_kernel(%arg0: i32, %arg1: memref<1x2048xf32, #tpu.memory_space<vmem>>, %arg2: memref<1x2048xf32, #tpu.memory_space<vmem>>) attributes {dimension_semantics = [#tpu.dimension_semantics<parallel>], iteration_bounds = array<i64: 1>, scalar_prefetch = 0 : i64, scratch_operands = 0 : i64, tpu.core_type = #tpu.core_type<tc>, window_params = [{transform_indices = @transform_0, window_bounds = array<i64: 1, 2048>}, {transform_indices = @transform_1, window_bounds = array<i64: 1, 2048>}]} {
    %c0 = arith.constant 0 : index
    %c0_0 = arith.constant 0 : index
    %0 = vector.load %arg1[%c0, %c0_0] : memref<1x2048xf32, #tpu.memory_space<vmem>>, vector<1x2048xf32>
    %cst = arith.constant 0.000000e+00 : f32
    %1 = vector.broadcast %cst : f32 to vector<1x2048xf32>
    %2 = arith.cmpf ogt, %0, %1 : vector<1x2048xf32>
    %cst_1 = arith.constant 0.00999999977 : f32
    %3 = vector.broadcast %cst_1 : f32 to vector<1x2048xf32>
    %4 = arith.mulf %3, %0 : vector<1x2048xf32>
    %5 = math.exp %0 : vector<1x2048xf32>
    %cst_2 = arith.constant 1.000000e+00 : f32
    %6 = vector.broadcast %cst_2 : f32 to vector<1x2048xf32>
    %7 = arith.subf %5, %6 : vector<1x2048xf32>
    %8 = arith.mulf %4, %7 : vector<1x2048xf32>
    %9 = arith.select %2, %0, %8 : vector<1x2048xi1>, vector<1x2048xf32>
    %c0_3 = arith.constant 0 : index
    %c0_4 = arith.constant 0 : index
    %10 = vector.load %arg2[%c0_3, %c0_4] : memref<1x2048xf32, #tpu.memory_space<vmem>>, vector<1x2048xf32>
    tpu.vector_store %arg2[%c0_3, %c0_4], %9 {strides = array<i32>} : memref<1x2048xf32, #tpu.memory_space<vmem>>, vector<1x2048xf32>,
    return
  }
  func.func @transform_0(%arg0: i32) -> (i32, i32) {
    %c0_i32 = arith.constant 0 : i32
    %c0_i32_0 = arith.constant 0 : i32
    return %arg0, %c0_i32 : i32, i32
  }
  func.func @transform_1(%arg0: i32) -> (i32, i32) {
    %c0_i32 = arith.constant 0 : i32
    %c0_i32_0 = arith.constant 0 : i32
    return %arg0, %c0_i32 : i32, i32
  }
}

</mosaic_0001>

<bundles_post_ra>
// kernel: tpu_custom_call.1
= control target key start
LH: loop header
LB: loop body
LE: loop exit
PB: predicated region body
PF: predicated region fallthrough
CT: control target
= control target key end

     0   :  { %6 = vsyncpa [#allocation3], 0  ;;  %s146_s0 = inlined_call_operand.hbm [shape: f32[1,2048], index: 0, kind: input, shape index: {}]   ;;  %s147_s1 = inlined_call_operand.hbm [shape: f32[1,2048], index: 1, kind: output, shape index: {}]  }
   0x1   :  { %7 = vsyncpa [#allocation4], 0  ;;  %s110_s6 = smov [#allocation2]   ;;  %s62_s10 = scalar_lea.hbm %s146_s0, 256 }
   0x2   :  { %s14_s7 = sshll.u32 %s110_s6, 4  ;;  %p63_p0 = scmp.ne.s32.totalorder %s146_s0, %s62_s10  ;;  %s15_s7 = int_to_ptr.vmem [resolvable:$true] %s14_s7 }
   0x3   :  { %p66_p1 = scmp.lt.u32.totalorder %s62_s10, %s146_s0 }
   0x5   :  { %p68_p2 = pnand %p66_p1, %p63_p0 }
   0x7   :  { %71 = shalt.err (!%p68_p2)
}
   0x8   :  { %s72_s15 = scalar_lea.vmem %s15_s7, 256  ;;  %p77_p4 = scmp.lt.s32.totalorder %s15_s7, %s15_s7 }
   0x9   :  { %p73_p3 = scmp.ne.s32.totalorder %s15_s7, %s72_s15  ;;  %p78_p5 = scmp.lt.s32.totalorder %s72_s15, %s72_s15 }
   0xb   :  { %p79_p6 = por %p78_p5, %p77_p4 }
   0xd   :  { %p80_p7 = pnand %p79_p6, %p73_p3 }
   0xf   :  { %83 = shalt.err (!%p80_p7)
}
  0x10   :  { %17 = dma.hbm_to_vmem [thread:$0]  %s146_s0, 256, %s15_s7, [#allocation3]  }
  0x11   :  { %106 = dma.done.wait [#allocation3], 256  }
  0x12   :  { %107 = vsyncadd [#allocation3], 4294967040  ;;  %v21_v0 = vld [vmem:[#allocation2] sm:$0xff]  ;;  %v22_v1 = vld [vmem:[#allocation2 + $0x8] sm:$0xff]  ;;  %s111_s18 = smov [#allocation5]  }
  0x13   :  { %v27_v2 = vmul.f32 1.442695, %v21_v0  ;;  %v29_v3 = vmul.f32 1.442695, %v22_v1  ;;  %v25_v4 = vmul.f32 0.01, %v21_v0 }
  0x14   :  { %v26_v6 = vmul.f32 0.01, %v22_v1  ;;  %vm23_vm0 = vcmp.gt.f32.partialorder %v21_v0, 0.0  ;;  %s45_s19 = sshll.u32 %s111_s18, 4  ;;  %vm24_vm1 = vcmp.gt.f32.partialorder %v22_v1, 0.0  ;;  %s46_s19 = int_to_ptr.vmem [resolvable:$true] %s45_s19 }
  0x15   :  { %58 = vpow2.f32 %v27_v2  ;;  %s84_s0 = scalar_lea.vmem %s46_s19, 256  ;;  %p89_p9 = scmp.lt.s32.totalorder %s46_s19, %s46_s19 }
  0x16   :  { %60 = vpow2.f32 %v29_v3  ;;  %p85_p8 = scmp.ne.s32.totalorder %s46_s19, %s84_s0  ;;  %p90_p10 = scmp.lt.s32.totalorder %s84_s0, %s84_s0 }
  0x18   :  { %p91_p11 = por %p90_p10, %p89_p9 }
  0x1a   :  { %p92_p12 = pnand %p91_p11, %p85_p8 }
  0x1f   :  { %v59_v5 = vpop.eup %58 }
  0x20   :  { %v61_v7 = vpop.eup %60  ;;  %v54_v8 = vadd.f32 -1.0, %v59_v5 }
  0x21   :  { %v55_v9 = vadd.f32 -1.0, %v61_v7 }
  0x22   :  { %v33_v10 = vmul.f32 %v54_v8, %v25_v4 }
  0x23   :  { %v34_v11 = vmul.f32 %v55_v9, %v26_v6 }
  0x24   :  { %v35_v12 = vsel %vm23_vm0, %v21_v0, %v33_v10 }
  0x25   :  { %37 = vst [vmem:[#allocation5] sm:$0xff] %v35_v12  ;;  %v36_v13 = vsel %vm24_vm1, %v22_v1, %v34_v11 }
  0x26   :  { %38 = vst [vmem:[#allocation5 + $0x8] sm:$0xff] %v36_v13 }
  0x27   :  { %95 = shalt.err (!%p92_p12)
}
  0x28   :  { %s96_s22 = scalar_lea.hbm %s147_s1, 256 }
  0x29   :  { %p97_p13 = scmp.ne.s32.totalorder %s147_s1, %s96_s22  ;;  %p100_p0 = scmp.lt.u32.totalorder %s96_s22, %s147_s1 }
  0x2b   :  { %p102_p1 = pnand %p100_p0, %p97_p13 }
  0x2d   :  { %105 = shalt.err (!%p102_p1)
}
  0x2e   :  { %48 = dma.vmem_to_hbm [thread:$0]  %s46_s19, 256, %s147_s1, [#allocation4]  }
  0x2f   :  { %108 = dma.done.wait [#allocation4], 256  }
  0x30   :  { %109 = vsyncadd [#allocation4], 4294967040 }
  0x31   :  { %52 = vsyncpa [#allocation3], 1 }
  0x32   :  { %53 = vsyncpa [#allocation4], 1 }

</bundles_post_ra>
